<compile_context>
chip_gen: v7x
topology: tpu7x:2x2x1
jax: 0.10.0
libtpu: 0.0.40
codegen_flags: <defaults>
</compile_context>

<pallas_src>
import jax
import jax.numpy as jnp
from jax.experimental import pallas as pl
from jax.experimental.pallas import tpu as pltpu


def ensemble_fused_kernel(x_ref, w1_ref, b1_ref, w2_ref, b2_ref, o_ref):
    # x : [B, Da+Db]         w1: [Da+Db, M*H]   b1: [1, M*H]
    # w2: [M*H, Dout] (pre-scaled by 1/M)       b2: [1, Dout] (mean over models)
    h = (jnp.dot(x_ref[...], w1_ref[...], preferred_element_type=jnp.float32)
         + b1_ref[...])
    h = jnp.maximum(h, 0.0)
    o_ref[...] = (jnp.dot(h, w2_ref[...], preferred_element_type=jnp.float32)
                  + b2_ref[...]).astype(o_ref.dtype)


def ensemble_forward(a, b, w1a, w1b, b1, w2, b2):
    """a: [B, Da], b: [B, Db]; stacked per-model weights:
       w1a: [M, Da, H], w1b: [M, Db, H], b1: [M, 1, H],
       w2:  [M, H, Dout], b2: [M, 1, Dout].
       Returns mean over the M models of the per-model MLP output: [B, Dout]."""
    M, Da, H = w1a.shape
    _, Db, _ = w1b.shape
    _, _, Dout = w2.shape
    B = a.shape[0]

    # --- one-time layout prep in the wrapper (plain XLA, outside the kernel) ---
    x = jnp.concatenate([a, b], axis=1)                               # [B, Da+Db]
    w1 = jnp.concatenate([w1a, w1b], axis=1)                          # [M, Da+Db, H]
    w1 = jnp.transpose(w1, (1, 0, 2)).reshape(Da + Db, M * H)         # [Da+Db, M*H]
    b1f = jnp.transpose(b1, (1, 0, 2)).reshape(1, M * H)              # [1, M*H]
    # Second layer: rows ordered (m outer, hidden inner) to match h's columns.
    w2f = (w2.reshape(M * H, Dout) * (1.0 / M)).astype(jnp.float32)   # [M*H, Dout]
    b2f = jnp.mean(b2, axis=0).reshape(1, Dout)                       # [1, Dout]

    vmem = pltpu.MemorySpace.VMEM
    return pl.pallas_call(
        ensemble_fused_kernel,
        out_shape=jax.ShapeDtypeStruct((B, Dout), jnp.float32),
        # No grid: everything is a single whole-array VMEM block.
        in_specs=[pl.BlockSpec(memory_space=vmem)] * 5,
        out_specs=pl.BlockSpec(memory_space=vmem),
    )(x, w1, b1f, w2f, b2f)


def ensemble_forward_ref(a, b, w1a, w1b, b1, w2, b2):
    """Plain-JAX reference mirroring the PyTorch semantics:
       stack([model_m(a, b) for m]).mean(0)."""
    h = jnp.einsum("bd,mdh->mbh", a, w1a) + jnp.einsum("bd,mdh->mbh", b, w1b) + b1
    h = jnp.maximum(h, 0.0)
    outs = jnp.einsum("mbh,mho->mbo", h, w2) + b2   # [M, B, Dout]
    return outs.mean(0)


if __name__ == "__main__":
    key = jax.random.PRNGKey(0)
    M = 3        # number of models in the ensemble
    B = 8        # batch
    Da = 32      # feature dim of input a
    Db = 32      # feature dim of input b
    H = 64       # hidden dim
    Dout = 32    # output dim

    keys = jax.random.split(key, 7)
    a = jax.random.normal(keys[0], (B, Da), dtype=jnp.float32)
    b = jax.random.normal(keys[1], (B, Db), dtype=jnp.float32)
    w1a = jax.random.normal(keys[2], (M, Da, H), dtype=jnp.float32) * 0.1
    w1b = jax.random.normal(keys[3], (M, Db, H), dtype=jnp.float32) * 0.1
    b1 = jax.random.normal(keys[4], (M, 1, H), dtype=jnp.float32) * 0.1
    w2 = jax.random.normal(keys[5], (M, H, Dout), dtype=jnp.float32) * 0.1
    b2 = jax.random.normal(keys[6], (M, 1, Dout), dtype=jnp.float32) * 0.1

    out = ensemble_forward(a, b, w1a, w1b, b1, w2, b2)
    out = jax.block_until_ready(out)

    ref = ensemble_forward_ref(a, b, w1a, w1b, b1, w2, b2)
    assert out.shape == (B, Dout)
    assert jnp.allclose(out, ref, atol=1e-4, rtol=1e-4), "mismatch vs reference"

    print("KERNEL_OK")
</pallas_src>

<mosaic_0001>
module attributes {stable_mosaic.version = 11 : i64} {
  func.func @ensemble_fused_kernel(%arg0: memref<8x64xf32, #tpu.memory_space<vmem>>, %arg1: memref<64x192xf32, #tpu.memory_space<vmem>>, %arg2: memref<1x192xf32, #tpu.memory_space<vmem>>, %arg3: memref<192x32xf32, #tpu.memory_space<vmem>>, %arg4: memref<1x32xf32, #tpu.memory_space<vmem>>, %arg5: memref<8x32xf32, #tpu.memory_space<vmem>>) attributes {dimension_semantics = [], scalar_prefetch = 0 : i64, scratch_operands = 0 : i64, tpu.core_type = #tpu.core_type<tc>} {
    %c0 = arith.constant 0 : index
    %c0_0 = arith.constant 0 : index
    %0 = vector.load %arg0[%c0, %c0_0] : memref<8x64xf32, #tpu.memory_space<vmem>>, vector<8x64xf32>
    %c0_1 = arith.constant 0 : index
    %c0_2 = arith.constant 0 : index
    %1 = vector.load %arg1[%c0_1, %c0_2] : memref<64x192xf32, #tpu.memory_space<vmem>>, vector<64x192xf32>
    %cst = arith.constant dense<0.000000e+00> : vector<8x192xf32>
    %2 = tpu.matmul %0, %1, %cst {dimension_numbers = #tpu.dot_dimension_numbers<[1], [0], [0], [1], [0, 0, 1, 1], [], []>} : vector<8x64xf32>, vector<64x192xf32>, vector<8x192xf32> -> vector<8x192xf32>
    %c0_3 = arith.constant 0 : index
    %c0_4 = arith.constant 0 : index
    %3 = vector.load %arg2[%c0_3, %c0_4] : memref<1x192xf32, #tpu.memory_space<vmem>>, vector<1x192xf32>
    %4 = vector.broadcast %3 : vector<1x192xf32> to vector<8x192xf32>
    %5 = arith.addf %2, %4 : vector<8x192xf32>
    %cst_5 = arith.constant 0.000000e+00 : f32
    %6 = vector.broadcast %cst_5 : f32 to vector<8x192xf32>
    %7 = arith.maximumf %5, %6 : vector<8x192xf32>
    %c0_6 = arith.constant 0 : index
    %c0_7 = arith.constant 0 : index
    %8 = vector.load %arg3[%c0_6, %c0_7] : memref<192x32xf32, #tpu.memory_space<vmem>>, vector<192x32xf32>
    %cst_8 = arith.constant dense<0.000000e+00> : vector<8x32xf32>
    %9 = tpu.matmul %7, %8, %cst_8 {dimension_numbers = #tpu.dot_dimension_numbers<[1], [0], [0], [1], [0, 0, 1, 1], [], []>} : vector<8x192xf32>, vector<192x32xf32>, vector<8x32xf32> -> vector<8x32xf32>
    %c0_9 = arith.constant 0 : index
    %c0_10 = arith.constant 0 : index
    %10 = vector.load %arg4[%c0_9, %c0_10] : memref<1x32xf32, #tpu.memory_space<vmem>>, vector<1x32xf32>
    %11 = vector.broadcast %10 : vector<1x32xf32> to vector<8x32xf32>
    %12 = arith.addf %9, %11 : vector<8x32xf32>
    %c0_11 = arith.constant 0 : index
    %c0_12 = arith.constant 0 : index
    %13 = vector.load %arg5[%c0_11, %c0_12] : memref<8x32xf32, #tpu.memory_space<vmem>>, vector<8x32xf32>
    tpu.vector_store %arg5[%c0_11, %c0_12], %12 {strides = array<i32>} : memref<8x32xf32, #tpu.memory_space<vmem>>, vector<8x32xf32>,
    return
  }
}

</mosaic_0001>

<bundles_post_ra>
// kernel: tpu_custom_call.1
= control target key start
LH: loop header
LB: loop body
LE: loop exit
PB: predicated region body
PF: predicated region fallthrough
CT: control target
= control target key end

     0   :  { %v329_v7 = vmov 0.0   ;;  %v330_v8 = vmov 0.0|0.0   ;;  %s517_s0 = inlined_call_operand.vmem [shape: f32[8,64], index: 0, kind: input, shape index: {}]   ;;  %s518_s1 = inlined_call_operand.vmem [shape: f32[64,192], index: 1, kind: input, shape index: {}]   ;;  %s519_s2 = inlined_call_operand.vmem [shape: f32[1,192], index: 2, kind: input, shape index: {}]   ;;  %s520_s3 = inlined_call_operand.vmem [shape: f32[192,32], index: 3, kind: input, shape index: {}]   ;;  %s521_s4 = inlined_call_operand.vmem [shape: f32[1,32], index: 4, kind: input, shape index: {}]   ;;  %s522_s5 = inlined_call_operand.hbm [shape: f32[8,32], index: 5, kind: output, shape index: {}]  }
   0x1   :  { %v23_v0 = vld [vmem:[%s518_s1 + $0x8] sm:$0xff]  ;;  %v25_v1 = vld [vmem:[%s518_s1 + $0x18] sm:$0xff]  ;;  %v22_v2 = vld [vmem:[%s518_s1] sm:$0xff]  ;;  %118 = vmatprep.mubr.f32.mxu0 %v329_v7  ;;  %266 = vmatprep.subr.bf16.mxu1 %v330_v8 }
   0x2   :  { %v250_v3 = vpack.c.bf16 %v25_v1, %v23_v0  ;;  %v24_v4 = vld [vmem:[%s518_s1 + $0x10] sm:$0xff]  ;;  %v27_v5 = vld [vmem:[%s518_s1 + $0x28] sm:$0xff]  ;;  %v29_v6 = vld [vmem:[%s518_s1 + $0x38] sm:$0xff] }
   0x3   :  { %v252_v9 = vpack.c.bf16 %v24_v4, %v22_v2  ;;  %v254_v10 = vpack.c.bf16 %v29_v6, %v27_v5  ;;  %v26_v11 = vld [vmem:[%s518_s1 + $0x20] sm:$0xff]  ;;  %v28_v12 = vld [vmem:[%s518_s1 + $0x30] sm:$0xff]  ;;  %v31_v13 = vld [vmem:[%s518_s1 + $0x48] sm:$0xff] }
   0x4   :  { %251 = vmatprep.subr.bf16.mxu0 %v250_v3  ;;  %v33_v14 = vld [vmem:[%s518_s1 + $0x58] sm:$0xff]  ;;  %v256_v15 = vpack.c.bf16 %v28_v12, %v26_v11  ;;  %v30_v16 = vld [vmem:[%s518_s1 + $0x40] sm:$0xff]  ;;  %v32_v17 = vld [vmem:[%s518_s1 + $0x50] sm:$0xff] }
   0x5   :  { %253 = vmatpush1.bf16.msra.mxu0 %v252_v9  ;;  %v258_v18 = vpack.c.bf16 %v33_v14, %v31_v13  ;;  %v35_v19 = vld [vmem:[%s518_s1 + $0x68] sm:$0xff]  ;;  %v37_v20 = vld [vmem:[%s518_s1 + $0x78] sm:$0xff]  ;;  %v127_v21 = vld [vmem:[%s520_s3] sm:$0xff]  ;;  %v260_v26 = vpack.c.bf16 %v32_v17, %v30_v16 }
   0x6   :  { %255 = vmatprep.subr.bf16.mxu0 %v254_v10  ;;  %v128_v22 = vld [vmem:[%s520_s3 + $0x8] sm:$0xff]  ;;  %v129_v23 = vld [vmem:[%s520_s3 + $0x10] sm:$0xff]  ;;  %v130_v24 = vld [vmem:[%s520_s3 + $0x18] sm:$0xff]  ;;  %v262_v27 = vpack.c.bf16 %v37_v20, %v35_v19 }
   0x7   :  { %v267_v25 = vpack.c.bf16 %v128_v22, %v127_v21  ;;  %v34_v28 = vld [vmem:[%s518_s1 + $0x60] sm:$0xff]  ;;  %v36_v29 = vld [vmem:[%s518_s1 + $0x70] sm:$0xff]  ;;  %v270_v30 = vpack.c.bf16 %v130_v24, %v129_v23  ;;  %v132_v32 = vld [vmem:[%s520_s3 + $0x28] sm:$0xff] }
   0x8   :  { %v131_v31 = vld [vmem:[%s520_s3 + $0x20] sm:$0xff]  ;;  %v264_v33 = vpack.c.bf16 %v36_v29, %v34_v28 }
   0x9   :  { %257 = vmatpush1.bf16.msra.mxu0 %v256_v15  ;;  %268 = vmatpush1.bf16.msra.mxu1 %v267_v25 }
   0xa   :  { %259 = vmatprep.subr.bf16.mxu0 %v258_v18  ;;  %269 = vmatprep.subr.bf16.mxu1 %v330_v8 }
   0xd   :  { %261 = vmatpush1.bf16.msra.mxu0 %v260_v26 }
   0xe   :  { %10 = vsyncpa [#allocation3], 0  ;;  %263 = vmatprep.subr.bf16.mxu0 %v262_v27  ;;  %271 = vmatpush1.bf16.msra.mxu1 %v270_v30  ;;  %v273_v34 = vpack.c.bf16 %v132_v32, %v131_v31  ;;  %v133_v35 = vld [vmem:[%s520_s3 + $0x30] sm:$0xff]  ;;  %v134_v36 = vld [vmem:[%s520_s3 + $0x38] sm:$0xff]  ;;  %vm50_vm0 = vcmask 523264   ;;  %v40_v63 = vlaneseq  ;;  %s331_s24 = smov [#allocation2]  }
   0xf   :  { %272 = vmatprep.subr.bf16.mxu1 %v330_v8  ;;  %v21_v37 = vld [vmem:[%s517_s0] sm:$0xff]  ;;  %v276_v38 = vpack.c.bf16 %v134_v36, %v133_v35  ;;  %v136_v40 = vld [vmem:[%s520_s3 + $0x48] sm:$0xff]  ;;  %v137_v42 = vld [vmem:[%s520_s3 + $0x50] sm:$0xff]  ;;  %s239_s25 = sshll.u32 %s331_s24, 4  ;;  %vm231_vm1 = vcmask 261120   ;;  %s240_s25 = int_to_ptr.vmem [resolvable:$true] %s239_s25 }
  0x10   :  { %v135_v39 = vld [vmem:[%s520_s3 + $0x40] sm:$0xff]  ;;  %v138_v43 = vld [vmem:[%s520_s3 + $0x58] sm:$0xff]  ;;  %v140_v46 = vld [vmem:[%s520_s3 + $0x68] sm:$0xff]  ;;  %v41_v0 = vshrl.u32 %v40_v63, 7  ;;  %p310_p1 = scmp.lt.s32.totalorder %s240_s25, %s240_s25 }
  0x11   :  { %265 = vmatpush1.bf16.msra.mxu0 %v264_v33  ;;  %v279_v41 = vpack.c.bf16 %v136_v40, %v135_v39  ;;  %v282_v44 = vpack.c.bf16 %v138_v43, %v137_v42  ;;  %v139_v45 = vld [vmem:[%s520_s3 + $0x60] sm:$0xff]  ;;  %v141_v48 = vld [vmem:[%s520_s3 + $0x70] sm:$0xff]  ;;  %v142_v49 = vld [vmem:[%s520_s3 + $0x78] sm:$0xff] }
  0x12   :  { %274 = vmatpush1.bf16.msra.mxu1 %v273_v34  ;;  %v285_v47 = vpack.c.bf16 %v140_v46, %v139_v45  ;;  %v288_v50 = vpack.c.bf16 %v142_v49, %v141_v48  ;;  %v143_v51 = vld [vmem:[%s520_s3 + $0x80] sm:$0xff]  ;;  %v144_v52 = vld [vmem:[%s520_s3 + $0x88] sm:$0xff]  ;;  %v145_v54 = vld [vmem:[%s520_s3 + $0x90] sm:$0xff]  ;;  %v42_v1 = vsub.s32 0, %v41_v0  ;;  %v46_v3 = vsub.s32 1, %v41_v0 }
  0x13   :  { %275 = vmatprep.subr.bf16.mxu1 %v330_v8  ;;  %v291_v53 = vpack.c.bf16 %v144_v52, %v143_v51  ;;  %v146_v55 = vld [vmem:[%s520_s3 + $0x98] sm:$0xff]  ;;  %v147_v57 = vld [vmem:[%s520_s3 + $0xa0] sm:$0xff]  ;;  %v148_v58 = vld [vmem:[%s520_s3 + $0xa8] sm:$0xff] }
  0x14   :  { %247 = vmatmul.mubr.msk.f32.vlgmr.msra.gmra.mrb[0].mxu0 %vm50_vm0, %v21_v37  ;;  %v294_v56 = vpack.c.bf16 %v146_v55, %v145_v54  ;;  %v297_v59 = vpack.c.bf16 %v148_v58, %v147_v57  ;;  %v149_v60 = vld [vmem:[%s520_s3 + $0xb0] sm:$0xff]  ;;  %v150_v61 = vld [vmem:[%s520_s3 + $0xb8] sm:$0xff]  ;;  %v38_v2 = vld [vmem:[%s519_s2] sm:$0x3]  ;;  %s305_s2 = scalar_lea.vmem %s240_s25, 128 }
  0x15   :  { %v300_v62 = vpack.c.bf16 %v150_v61, %v149_v60  ;;  %v43_v4 = vrot.slane %v38_v2, %v42_v1  ;;  %v47_v5 = vrot.slane %v38_v2, %v46_v3  ;;  %v248_v12 = vld [vmem:[%s521_s4] ss:$0 sm:$0xff]  ;;  %p306_p0 = scmp.ne.s32.totalorder %s240_s25, %s305_s2  ;;  %p311_p2 = scmp.lt.s32.totalorder %s305_s2, %s305_s2 }
  0x16   :  { %277 = vmatpush1.bf16.msra.mxu1 %v276_v38 }
  0x17   :  { %278 = vmatprep.subr.bf16.mxu1 %v330_v8  ;;  %p312_p3 = por %p311_p2, %p310_p1 }
  0x19   :  { %p313_p4 = pnand %p312_p3, %p306_p0 }
  0x1a   :  { %280 = vmatpush1.bf16.msra.mxu1 %v279_v41 }
  0x1b   :  { %281 = vmatprep.subr.bf16.mxu1 %v330_v8 }
  0x1e   :  { %283 = vmatpush1.bf16.msra.mxu1 %v282_v44 }
  0x1f   :  { %284 = vmatprep.subr.bf16.mxu1 %v330_v8 }
  0x22   :  { %286 = vmatpush1.bf16.msra.mxu1 %v285_v47 }
  0x23   :  { %287 = vmatprep.subr.bf16.mxu1 %v330_v8 }
  0x26   :  { %289 = vmatpush1.bf16.msra.mxu1 %v288_v50 }
  0x27   :  { %290 = vmatprep.subr.bf16.mxu1 %v330_v8 }
  0x2a   :  { %292 = vmatpush1.bf16.msra.mxu1 %v291_v53 }
  0x2b   :  { %293 = vmatprep.subr.bf16.mxu1 %v330_v8 }
  0x2e   :  { %295 = vmatpush1.bf16.msra.mxu1 %v294_v56 }
  0x2f   :  { %296 = vmatprep.subr.bf16.mxu1 %v330_v8 }
  0x32   :  { %298 = vmatpush1.bf16.msra.mxu1 %v297_v59 }
  0x33   :  { %299 = vmatprep.subr.bf16.mxu1 %v330_v8 }
  0x36   :  { %301 = vmatpush1.bf16.msra.mxu1 %v300_v62 }
  0xe7   :  { %v120_v6 = vpop.f32.mrb[0].mxu0 }
  0xe8   :  { %v121_v7 = vadd.f32 %v120_v6, %v43_v4  ;;  %v122_v8 = vpop.f32.mrb[1].mxu0 }
  0xe9   :  { %v123_v9 = vadd.f32 %v122_v8, %v47_v5 }
  0xea   :  { %v125_v11 = vmax.f32 %v121_v7, 0.0 }
  0xeb   :  { %v126_v10 = vmax.f32 %v123_v9, 0.0 }
  0xed   :  { %249 = vmatprep.mubr.msk.f32.mxu1 %vm50_vm0, %v126_v10 }
  0xee   :  { %226 = vmatmul.mubr.f32.vlgmr.msra.gmra.mrb[0].mxu1 %v125_v11 }
 0x1c1   :  { %v227_v13 = vpop.f32.mrb[0].mxu1 }
 0x1c2   :  { %v228_v14 = vadd.f32 %v248_v12, %v227_v13  ;;  %v229_v15 = vpop.f32.mrb[1].mxu1 }
 0x1c4   :  { %232 = vst.msk [vmem:[#allocation2] sm:$0xff] %vm231_vm1, %v228_v14 }
 0x1c5   :  { %316 = shalt.err (!%p313_p4)
}
 0x1c6   :  { %s317_s28 = scalar_lea.hbm %s522_s5, 128 }
 0x1c7   :  { %p318_p5 = scmp.ne.s32.totalorder %s522_s5, %s317_s28  ;;  %p321_p6 = scmp.lt.u32.totalorder %s317_s28, %s522_s5 }
 0x1c9   :  { %p323_p7 = pnand %p321_p6, %p318_p5 }
 0x1cb   :  { %326 = shalt.err (!%p323_p7)
}
 0x1cc   :  { %242 = dma.vmem_to_hbm [thread:$0]  %s240_s25, 128, %s522_s5, [#allocation3]  }
 0x1cd   :  { %327 = dma.done.wait [#allocation3], 128  }
 0x1ce   :  { %328 = vsyncadd [#allocation3], 4294967168 }
 0x1cf   :  { %246 = vsyncpa [#allocation3], 1 }

</bundles_post_ra>
